<compile_context>
chip_gen: v6e
topology: v6e:2x2x1
jax: 0.10.0
libtpu: 0.0.40
codegen_flags: <defaults>
</compile_context>

<pallas_src>
import functools

import jax
import jax.numpy as jnp
from jax import lax
from jax.experimental import pallas as pl
from jax.experimental.pallas import tpu as pltpu

LANE = 128
SUBLANE = 8


def _round_up(x, m):
    return (x + m - 1) // m * m


# ----------------------------- Pallas kernel ------------------------------- #

def _output_block_kernel(h_ref, batch_ref, w1_ref, b1_ref, w2_ref, b2_ref,
                         out_ref, *, n_rows, accumulate):
    """One row-tile of the OutputBlock forward.

    h_ref     : [TM, H]   node embeddings (bf16/f32)
    batch_ref : [TM, 1]   graph index per node (int32; tail rows may be garbage)
    w1_ref    : [H, HP]   lin1 weight, pre-transposed, lane-padded (HP % 128 == 0)
    b1_ref    : [1, HP]   lin1 bias, zero-padded (f32)
    w2_ref    : [1, HP]   lin2 weight row vector, zero-padded (f32)
    b2_ref    : [1, 1]    lin2 bias (f32)
    out_ref   : [8, BP]   per-tile partials (parallel mode) or resident accumulator
    """
    tm = h_ref.shape[0]
    bp = out_ref.shape[1]
    i = pl.program_id(0)

    # lin1 on the MXU (bf16 x bf16 -> f32 accumulate) + swish.
    x = jnp.dot(h_ref[...], w1_ref[...],
                preferred_element_type=jnp.float32) + b1_ref[...]
    h1 = x * (0.5 * (1.0 + jnp.tanh(0.5 * x)))        # swish, single EUP tanh

    # lin2 (output width 1): VPU multiply + XLU lane reduce (no 1-wide MXU pass).
    e = jnp.sum(h1 * w2_ref[...], axis=1, keepdims=True) + b2_ref[...]   # [TM,1]

    # Kill tail rows of the last (partial) tile: everything downstream is driven
    # by e, so zeroing it here makes garbage h / batch tail data harmless.
    row = lax.broadcasted_iota(jnp.int32, (tm, 1), 0)
    e = jnp.where(i * tm + row < n_rows, e, 0.0)

    # scatter(e, batch, reduce='add') for this tile: (TM,1) ids vs a hoisted
    # (1, BP) graph-id iota (broadcast by the compare -> no TM x BP iota work).
    graph_ids = lax.broadcasted_iota(jnp.int32, (1, bp), 1)
    contrib = jnp.where(batch_ref[...] == graph_ids, e, 0.0)             # [TM,BP]

    # Fold TM rows onto 8 sublanes with cheap VALU adds; the tiny remaining
    # reduction happens outside the kernel.
    fold = contrib.reshape(tm // SUBLANE, SUBLANE, bp).sum(axis=0)       # [8,BP]

    if accumulate:                       # single-TC chips: resident accumulator
        @pl.when(i == 0)
        def _():
            out_ref[...] = jnp.zeros_like(out_ref)
        out_ref[...] += fold
    else:                                # v7x: per-tile partials, parallel axis
        out_ref[...] = fold


# ------------------------------- wrappers ---------------------------------- #

def prepare_params(params, compute_dtype=jnp.bfloat16):
    """One-time (outside jit) weight re-layout.

    PyTorch Linear is y = x @ W^T + b; transpose once, zero-pad the narrow
    output dim up to lane width (128), and cast the matmul weight to the
    compute dtype (bf16) so the kernel's HBM traffic / MXU input are halved.
    """
    w1 = jnp.asarray(params["lin1_w"], jnp.float32)      # [H2, H]
    b1 = jnp.asarray(params["lin1_b"], jnp.float32)      # [H2]
    w2 = jnp.asarray(params["lin2_w"], jnp.float32)      # [1, H2]
    b2 = jnp.asarray(params["lin2_b"], jnp.float32)      # [1]
    h2, h = w1.shape
    hp = _round_up(h2, LANE)
    w1_t = (jnp.zeros((h, hp), jnp.float32).at[:, :h2].set(w1.T)
            .astype(compute_dtype))
    b1_p = jnp.zeros((1, hp), jnp.float32).at[0, :h2].set(b1)
    w2_v = jnp.zeros((1, hp), jnp.float32).at[0, :h2].set(w2[0])
    b2_p = b2.reshape(1, 1)
    return {"w1_t": w1_t, "b1": b1_p, "w2_v": w2_v, "b2": b2_p}


def _is_multi_tensorcore_chip():
    """True for chips with >1 TensorCore (v7x): keep per-tile parallel partials."""
    try:
        kind = jax.devices()[0].device_kind.lower()
    except Exception:
        return False
    return "v7" in kind


@functools.partial(jax.jit,
                   static_argnames=("num_graphs", "block_rows", "partial_output"))
def output_block_forward(h, batch, prepared, *, num_graphs, block_rows=1024,
                         partial_output=None):
    """OutputBlock forward: [N, H] embeddings + [N] graph ids -> [num_graphs, 1]."""
    n, hdim = h.shape
    assert block_rows % SUBLANE == 0, "block_rows must be a multiple of 8"

    if partial_output is None:                 # resolved at trace time
        partial_output = _is_multi_tensorcore_chip()

    w1_t, b1, w2_v, b2 = (prepared["w1_t"], prepared["b1"],
                          prepared["w2_v"], prepared["b2"])
    hp = w1_t.shape[1]
    bp = _round_up(max(num_graphs, 1), LANE)

    # Tile size: large enough to amortize per-step overhead, never (much) larger
    # than N; on v7x keep >= 2 grid steps so both TensorCores get work.
    tm = min(block_rows, _round_up(n, SUBLANE))
    if partial_output:
        tm = max(SUBLANE, min(tm, _round_up(pl.cdiv(n, 2), SUBLANE)))
    num_tiles = int(pl.cdiv(n, tm))

    # bf16 for the dominant HBM->VMEM path + MXU input (epilogue stays f32).
    # Ideally the upstream producer already emits bf16 so this cast is a no-op.
    h_c = h.astype(w1_t.dtype)
    batch_c = batch.astype(jnp.int32).reshape(n, 1)   # no host padding / rebuild

    # Explicit VMEM budget (double-buffered inputs + intermediates), x2 headroom,
    # capped well below v7x's 64 MiB physical VMEM.
    itm = jnp.dtype(w1_t.dtype).itemsize
    est = (2 * tm * hdim * itm                       # h tile (double-buffered)
           + 2 * (tm // SUBLANE) * 4096              # (TM,1) i32 batch tile, lane-padded
           + 2 * hdim * hp * itm + 6 * hp * 4        # resident weights / biases
           + tm * hp * 4                             # h1
           + 2 * tm * bp * 4                         # mask + contrib
           + 4 * SUBLANE * bp * 4)                   # output block
    vmem_limit = int(min(48 << 20, max(32 << 20, 2 * est)))

    out_rows = (num_tiles * SUBLANE) if partial_output else SUBLANE
    out_index_map = (lambda i: (i, 0)) if partial_output else (lambda i: (0, 0))
    semantics = ("parallel",) if partial_output else ("arbitrary",)

    kernel = functools.partial(_output_block_kernel, n_rows=n,
                               accumulate=not partial_output)

    partials = pl.pallas_call(
        kernel,
        out_shape=jax.ShapeDtypeStruct((out_rows, bp), jnp.float32),
        grid=(num_tiles,),
        in_specs=[
            pl.BlockSpec((tm, hdim), lambda i: (i, 0)),   # h tile
            pl.BlockSpec((tm, 1), lambda i: (i, 0)),      # batch tile
            pl.BlockSpec((hdim, hp), lambda i: (0, 0)),   # w1 (resident)
            pl.BlockSpec((1, hp), lambda i: (0, 0)),      # b1 (resident)
            pl.BlockSpec((1, hp), lambda i: (0, 0)),      # w2 row (resident)
            pl.BlockSpec((1, 1), lambda i: (0, 0)),       # b2 (resident)
        ],
        out_specs=pl.BlockSpec((SUBLANE, bp), out_index_map),
        compiler_params=pltpu.CompilerParams(
            dimension_semantics=semantics,
            vmem_limit_bytes=vmem_limit),
    )(h_c, batch_c, w1_t, b1, w2_v, b2)

    # Tiny final reduction + un-pad, in plain JAX.
    return partials.sum(axis=0)[:num_graphs][:, None]


# --------------------------- parameter init -------------------------------- #

def xavier_uniform(key, out_dim, in_dim):
    bound = jnp.sqrt(6.0 / (in_dim + out_dim))
    return jax.random.uniform(key, (out_dim, in_dim), jnp.float32, -bound, bound)


def init_params(key, hidden_channels):
    h2 = hidden_channels // 2
    kw1, kb1, kw2, kb2 = jax.random.split(key, 4)
    return {
        "lin1_w": xavier_uniform(kw1, h2, hidden_channels),
        "lin1_b": 0.1 * jax.random.normal(kb1, (h2,), jnp.float32),
        "lin2_w": xavier_uniform(kw2, 1, h2),
        "lin2_b": 0.1 * jax.random.normal(kb2, (1,), jnp.float32),
    }


# ------------------------- pure-JAX reference ------------------------------ #

def reference_forward(h, batch, params, num_graphs, compute_dtype=jnp.float32):
    """Reference that mirrors the kernel's numerics: h / lin1_w quantized to the
    compute dtype (bf16 on the HBM/MXU path), f32 accumulation everywhere else."""
    hq = h.astype(compute_dtype).astype(jnp.float32)
    w1 = params["lin1_w"].astype(compute_dtype).astype(jnp.float32)
    x = jnp.dot(hq, w1.T, precision=jax.lax.Precision.HIGHEST) + params["lin1_b"]
    h1 = x * (0.5 * (1.0 + jnp.tanh(0.5 * x)))
    e = (h1 * params["lin2_w"][0][None, :]).sum(axis=1, keepdims=True)
    e = e + params["lin2_b"]
    return jax.ops.segment_sum(e, batch, num_segments=num_graphs)


# --------------------------------- main ------------------------------------ #

if __name__ == "__main__":
    hidden_channels = 32
    num_nodes = 200
    num_graphs = 3

    key = jax.random.PRNGKey(0)
    kh, kb, kp = jax.random.split(key, 3)

    h = jax.random.normal(kh, (num_nodes, hidden_channels), jnp.float32)
    batch = jnp.sort(
        jax.random.randint(kb, (num_nodes,), 0, num_graphs)).astype(jnp.int32)
    assert int(batch.max()) < num_graphs   # segment_sum-style semantics

    params = init_params(kp, hidden_channels)
    prepared = prepare_params(params)      # one-time re-layout + bf16, outside jit

    out = output_block_forward(h, batch, prepared, num_graphs=num_graphs)
    jax.block_until_ready(out)

    out_ref = reference_forward(h, batch, params, num_graphs,
                                compute_dtype=prepared["w1_t"].dtype)
    assert out.shape == (num_graphs, 1)
    assert jnp.allclose(out, out_ref, atol=1e-3, rtol=1e-3), (
        f"mismatch:\n{out}\nvs\n{out_ref}")

    print("KERNEL_OK")
</pallas_src>

<mosaic_0001>
module attributes {stable_mosaic.version = 11 : i64} {
  func.func @_output_block_kernel(%arg0: i32, %arg1: memref<200x32xbf16, #tpu.memory_space<vmem>>, %arg2: memref<200x1xi32, #tpu.memory_space<vmem>>, %arg3: memref<32x128xbf16, #tpu.memory_space<vmem>>, %arg4: memref<1x128xf32, #tpu.memory_space<vmem>>, %arg5: memref<1x128xf32, #tpu.memory_space<vmem>>, %arg6: memref<1x1xf32, #tpu.memory_space<vmem>>, %arg7: memref<8x128xf32, #tpu.memory_space<vmem>>) attributes {dimension_semantics = [#tpu.dimension_semantics<arbitrary>], iteration_bounds = array<i64: 1>, scalar_prefetch = 0 : i64, scratch_operands = 0 : i64, tpu.core_type = #tpu.core_type<tc>, window_params = [{transform_indices = @transform_0, window_bounds = array<i64: 200, 32>}, {transform_indices = @transform_1, window_bounds = array<i64: 200, 1>}, {pipeline_mode = #tpu.pipeline_mode<synchronous>, transform_indices = @transform_2, window_bounds = array<i64: 32, 128>}, {pipeline_mode = #tpu.pipeline_mode<synchronous>, transform_indices = @transform_3, window_bounds = array<i64: 1, 128>}, {pipeline_mode = #tpu.pipeline_mode<synchronous>, transform_indices = @transform_4, window_bounds = array<i64: 1, 128>}, {pipeline_mode = #tpu.pipeline_mode<synchronous>, transform_indices = @transform_5, window_bounds = array<i64: 1, 1>}, {pipeline_mode = #tpu.pipeline_mode<synchronous>, transform_indices = @transform_6, window_bounds = array<i64: 8, 128>}]} {
    %c0 = arith.constant 0 : index
    %c0_0 = arith.constant 0 : index
    %0 = vector.load %arg1[%c0, %c0_0] : memref<200x32xbf16, #tpu.memory_space<vmem>>, vector<200x32xbf16>
    %c0_1 = arith.constant 0 : index
    %c0_2 = arith.constant 0 : index
    %1 = vector.load %arg3[%c0_1, %c0_2] : memref<32x128xbf16, #tpu.memory_space<vmem>>, vector<32x128xbf16>
    %cst = arith.constant dense<0.000000e+00> : vector<200x128xf32>
    %2 = tpu.matmul %0, %1, %cst {dimension_numbers = #tpu.dot_dimension_numbers<[1], [0], [0], [1], [0, 0, 1, 1], [], []>} : vector<200x32xbf16>, vector<32x128xbf16>, vector<200x128xf32> -> vector<200x128xf32>
    %c0_3 = arith.constant 0 : index
    %c0_4 = arith.constant 0 : index
    %3 = vector.load %arg4[%c0_3, %c0_4] : memref<1x128xf32, #tpu.memory_space<vmem>>, vector<1x128xf32>
    %4 = vector.broadcast %3 : vector<1x128xf32> to vector<200x128xf32>
    %5 = arith.addf %2, %4 : vector<200x128xf32>
    %cst_5 = arith.constant 5.000000e-01 : f32
    %6 = vector.broadcast %cst_5 : f32 to vector<200x128xf32>
    %7 = arith.mulf %6, %5 : vector<200x128xf32>
    %8 = math.tanh %7 : vector<200x128xf32>
    %cst_6 = arith.constant 1.000000e+00 : f32
    %9 = vector.broadcast %cst_6 : f32 to vector<200x128xf32>
    %10 = arith.addf %9, %8 : vector<200x128xf32>
    %cst_7 = arith.constant 5.000000e-01 : f32
    %11 = vector.broadcast %cst_7 : f32 to vector<200x128xf32>
    %12 = arith.mulf %11, %10 : vector<200x128xf32>
    %13 = arith.mulf %5, %12 : vector<200x128xf32>
    %c0_8 = arith.constant 0 : index
    %c0_9 = arith.constant 0 : index
    %14 = vector.load %arg5[%c0_8, %c0_9] : memref<1x128xf32, #tpu.memory_space<vmem>>, vector<1x128xf32>
    %15 = vector.broadcast %14 : vector<1x128xf32> to vector<200x128xf32>
    %16 = arith.mulf %13, %15 : vector<200x128xf32>
    %cst_10 = arith.constant dense<0.000000e+00> : vector<200xf32>
    %17 = vector.multi_reduction <add>, %16, %cst_10 [1] : vector<200x128xf32> to vector<200xf32>
    %18 = vector.shape_cast %17 : vector<200xf32> to vector<200x1xf32>
    %c0_11 = arith.constant 0 : index
    %c0_12 = arith.constant 0 : index
    %19 = vector.load %arg6[%c0_11, %c0_12] : memref<1x1xf32, #tpu.memory_space<vmem>>, vector<1x1xf32>
    %20 = vector.broadcast %19 : vector<1x1xf32> to vector<200x1xf32>
    %21 = arith.addf %18, %20 : vector<200x1xf32>
    %22 = tpu.iota {dimensions = array<i32: 0>} : vector<200x1xi32>
    %c200_i32 = arith.constant 200 : i32
    %23 = arith.muli %arg0, %c200_i32 : i32
    %24 = vector.broadcast %23 : i32 to vector<200x1xi32>
    %25 = arith.addi %24, %22 : vector<200x1xi32>
    %c200_i32_13 = arith.constant 200 : i32
    %26 = vector.broadcast %c200_i32_13 : i32 to vector<200x1xi32>
    %27 = arith.cmpi slt, %25, %26 : vector<200x1xi32>
    %cst_14 = arith.constant 0.000000e+00 : f32
    %28 = vector.broadcast %cst_14 : f32 to vector<200x1xf32>
    %29 = arith.select %27, %21, %28 : vector<200x1xi1>, vector<200x1xf32>
    %30 = tpu.iota {dimensions = array<i32: 1>} : vector<1x128xi32>
    %c0_15 = arith.constant 0 : index
    %c0_16 = arith.constant 0 : index
    %31 = vector.load %arg2[%c0_15, %c0_16] : memref<200x1xi32, #tpu.memory_space<vmem>>, vector<200x1xi32>
    %32 = vector.broadcast %31 : vector<200x1xi32> to vector<200x128xi32>
    %33 = vector.broadcast %30 : vector<1x128xi32> to vector<200x128xi32>
    %34 = arith.cmpi eq, %32, %33 : vector<200x128xi32>
    %cst_17 = arith.constant 0.000000e+00 : f32
    %35 = vector.shape_cast %29 : vector<200x1xf32> to vector<200x1xf32>
    %36 = vector.broadcast %35 : vector<200x1xf32> to vector<200x128xf32>
    %37 = vector.broadcast %cst_17 : f32 to vector<200x128xf32>
    %38 = arith.select %34, %36, %37 : vector<200x128xi1>, vector<200x128xf32>
    %39 = vector.shape_cast %38 : vector<200x128xf32> to vector<25x8x128xf32>
    %cst_18 = arith.constant dense<0.000000e+00> : vector<8x128xf32>
    %40 = vector.multi_reduction <add>, %39, %cst_18 [0] : vector<25x8x128xf32> to vector<8x128xf32>
    %c0_i32 = arith.constant 0 : i32
    %41 = arith.cmpi eq, %arg0, %c0_i32 : i32
    %42 = arith.extui %41 : i1 to i32
    %c0_i32_19 = arith.constant 0 : i32
    %43 = arith.cmpi ne, %42, %c0_i32_19 : i32
    scf.if %43 {
      %cst_24 = arith.constant 0.000000e+00 : f32
      %47 = vector.broadcast %cst_24 : f32 to vector<8x128xf32>
      %c0_25 = arith.constant 0 : index
      %c0_26 = arith.constant 0 : index
      %48 = vector.load %arg7[%c0_25, %c0_26] : memref<8x128xf32, #tpu.memory_space<vmem>>, vector<8x128xf32>
      tpu.vector_store %arg7[%c0_25, %c0_26], %47 {strides = array<i32>} : memref<8x128xf32, #tpu.memory_space<vmem>>, vector<8x128xf32>,
    } else {
    }
    %c0_20 = arith.constant 0 : index
    %c0_21 = arith.constant 0 : index
    %44 = vector.load %arg7[%c0_20, %c0_21] : memref<8x128xf32, #tpu.memory_space<vmem>>, vector<8x128xf32>
    %45 = arith.addf %44, %40 : vector<8x128xf32>
    %c0_22 = arith.constant 0 : index
    %c0_23 = arith.constant 0 : index
    %46 = vector.load %arg7[%c0_22, %c0_23] : memref<8x128xf32, #tpu.memory_space<vmem>>, vector<8x128xf32>
    tpu.vector_store %arg7[%c0_22, %c0_23], %45 {strides = array<i32>} : memref<8x128xf32, #tpu.memory_space<vmem>>, vector<8x128xf32>,
    return
  }
  func.func @transform_0(%arg0: i32) -> (i32, i32) {
    %c0_i32 = arith.constant 0 : i32
    %c0_i32_0 = arith.constant 0 : i32
    return %arg0, %c0_i32 : i32, i32
  }
  func.func @transform_1(%arg0: i32) -> (i32, i32) {
    %c0_i32 = arith.constant 0 : i32
    %c0_i32_0 = arith.constant 0 : i32
    return %arg0, %c0_i32 : i32, i32
  }
  func.func @transform_2(%arg0: i32) -> (i32, i32) {
    %c0_i32 = arith.constant 0 : i32
    %c0_i32_0 = arith.constant 0 : i32
    %c0_i32_1 = arith.constant 0 : i32
    return %c0_i32, %c0_i32_0 : i32, i32
  }
  func.func @transform_3(%arg0: i32) -> (i32, i32) {
    %c0_i32 = arith.constant 0 : i32
    %c0_i32_0 = arith.constant 0 : i32
    %c0_i32_1 = arith.constant 0 : i32
    return %c0_i32, %c0_i32_0 : i32, i32
  }
  func.func @transform_4(%arg0: i32) -> (i32, i32) {
    %c0_i32 = arith.constant 0 : i32
    %c0_i32_0 = arith.constant 0 : i32
    %c0_i32_1 = arith.constant 0 : i32
    return %c0_i32, %c0_i32_0 : i32, i32
  }
  func.func @transform_5(%arg0: i32) -> (i32, i32) {
    %c0_i32 = arith.constant 0 : i32
    %c0_i32_0 = arith.constant 0 : i32
    %c0_i32_1 = arith.constant 0 : i32
    return %c0_i32, %c0_i32_0 : i32, i32
  }
  func.func @transform_6(%arg0: i32) -> (i32, i32) {
    %c0_i32 = arith.constant 0 : i32
    %c0_i32_0 = arith.constant 0 : i32
    %c0_i32_1 = arith.constant 0 : i32
    return %c0_i32, %c0_i32_0 : i32, i32
  }
}

</mosaic_0001>

<bundles_post_ra>
// kernel: output_block_forward.1
= control target key start
LH: loop header
LB: loop body
LE: loop exit
PB: predicated region body
PF: predicated region fallthrough
CT: control target
= control target key end

     0   :  { %v1144_v0 = vmov 0.0   ;;  %vm1145_vm0 = vmmov 0   ;;  %v1146_v4 = vmov 0   ;;  %vm137_vm1 = vcmask 261120   ;;  %s1627_s2 = inlined_call_operand.vmem [shape: bf16[32,128], index: 2, kind: input, shape index: {}]   ;;  %s1628_s0 = inlined_call_operand.vmem [shape: bf16[200,32], index: 0, kind: input, shape index: {}]   ;;  %s1629_s1 = inlined_call_operand.vmem [shape: s32[200,1], index: 1, kind: input, shape index: {}]   ;;  %s1630_s3 = inlined_call_operand.vmem [shape: f32[1,128], index: 3, kind: input, shape index: {}]   ;;  %s1631_s5 = inlined_call_operand.<no memory space> [shape: f32[1,1], index: 5, kind: input, shape index: {}]   ;;  %s1632_s4 = inlined_call_operand.vmem [shape: f32[1,128], index: 4, kind: input, shape index: {}]   ;;  %s1633_s6 = inlined_call_operand.vmem [shape: f32[8,128], index: 6, kind: output, shape index: {}]  }
   0x1   :  { %1014 = vmatprep.subr.bf16.mxu0 %v1144_v0  ;;  %1070 = vmatprep.subr.bf16.mxu1 %v1144_v0  ;;  %v1079_v1 = vld [vmem:[%s1627_s2 + $0x8] sm:$0xff]   ;;  %v1080_v2 = vld [vmem:[%s1627_s2] sm:$0xff]   ;;  %v1082_v5 = vld [vmem:[%s1628_s0 + $0x38] sm:$0xff]  }
   0x2   :  { %1018 = vmatprep.mubr.msk.bf16.mxu0 %vm1145_vm0, %v1144_v0  ;;  %1046 = vmatprep.mubr.msk.bf16.mxu1 %vm1145_vm0, %v1144_v0  ;;  %v1081_v3 = vld [vmem:[%s1628_s0] sm:$0xff]   ;;  %v1083_v6 = vld [vmem:[%s1628_s0 + $0x8] sm:$0xff]   ;;  %v659_v9 = vld [vmem:[%s1629_s1 + $0x10] sm:$0xff] }
   0x3   :  { %1015 = vmatpush3.bf16.msra.mxu0 %v1079_v1  ;;  %1072 = vmatpush3.bf16.msra.mxu1 %v1079_v1  ;;  %v1084_v7 = vld [vmem:[%s1628_s0 + $0x40] sm:$0xff]   ;;  %v658_v10 = vld [vmem:[%s1629_s1 + $0x8] sm:$0xff]  ;;  %v660_v11 = vld [vmem:[%s1629_s1 + $0x18] sm:$0xff] }
   0x4   :  { %1016 = vmatprep.subr.bf16.mxu0 %v1144_v0  ;;  %1071 = vmatprep.subr.bf16.mxu1 %v1144_v0  ;;  %v657_v8 = vld [vmem:[%s1629_s1] sm:$0xff]  ;;  %v667_v12 = vld [vmem:[%s1629_s1 + $0x50] sm:$0xff]  ;;  %v1086_v14 = vld [vmem:[%s1628_s0 + $0x48] sm:$0xff]  }
   0x5   :  { %1077 = vset.pattern.permute.xlu1 %v1146_v4  ;;  %1078 = vset.pattern.permute.xlu0 %v1146_v4  ;;  %v1085_v13 = vld [vmem:[%s1628_s0 + $0x10] sm:$0xff]   ;;  %v661_v15 = vld [vmem:[%s1629_s1 + $0x20] sm:$0xff]  ;;  %v662_v17 = vld [vmem:[%s1629_s1 + $0x28] sm:$0xff] }
   0x6   :  { %683 = vperm.xlu1 %1077, %v657_v8   ;;  %686 = vperm.xlu0 %1078, %v658_v10   ;;  %v669_v16 = vld [vmem:[%s1629_s1 + $0x60] sm:$0xff]  ;;  %v671_v18 = vld [vmem:[%s1629_s1 + $0x70] sm:$0xff]  ;;  %v1087_v19 = vld [vmem:[%s1628_s0 + $0x18] sm:$0xff]  }
   0x7   :  { %1017 = vmatpush3.bf16.msra.mxu0 %v1080_v2  ;;  %1073 = vmatpush3.bf16.msra.mxu1 %v1080_v2  ;;  %v1088_v20 = vld [vmem:[%s1628_s0 + $0x50] sm:$0xff]   ;;  %v664_v22 = vld [vmem:[%s1629_s1 + $0x38] sm:$0xff]  ;;  %v1089_v23 = vld [vmem:[%s1628_s0 + $0x20] sm:$0xff]  }
   0x8   :  { %v663_v21 = vld [vmem:[%s1629_s1 + $0x30] sm:$0xff]  ;;  %v1090_v24 = vld [vmem:[%s1628_s0 + $0x58] sm:$0xff]   ;;  %v665_v25 = vld [vmem:[%s1629_s1 + $0x40] sm:$0xff] }
   0x9   :  { %v666_v26 = vld [vmem:[%s1629_s1 + $0x48] sm:$0xff]  ;;  %v1092_v28 = vld [vmem:[%s1628_s0 + $0x60] ss:$0 sps:$4 sm:$0xff]   ;;  %v668_v29 = vld [vmem:[%s1629_s1 + $0x58] sm:$0xff] }
   0xa   :  { %1019 = vmatmul.mubr.msk.bf16.vlgmr.msra.gmra.mxu0 %vm137_vm1, %v1081_v3  ;;  %1047 = vmatmul.mubr.msk.bf16.vlgmr.msra.gmra.mxu1 %vm137_vm1, %v1082_v5  ;;  %v1091_v27 = vld [vmem:[%s1628_s0 + $0x28] sm:$0xff]   ;;  %v1093_v31 = vld [vmem:[%s1628_s0 + $0x30] sm:$0xff]   ;;  %v672_v32 = vld [vmem:[%s1629_s1 + $0x78] sm:$0xff] }
   0xb   :  { %1022 = vmatprep.mubr.msk.bf16.mxu0 %vm1145_vm0, %v1144_v0  ;;  %1050 = vmatprep.mubr.msk.bf16.mxu1 %vm1145_vm0, %v1144_v0  ;;  %v670_v30 = vld [vmem:[%s1629_s1 + $0x68] sm:$0xff]  ;;  %v1321_v33 = vld [vmem:[%s1630_s3] ss:$0 sm:$0xff] }
   0xc   :  { %689 = vperm.xlu1 %1077, %v659_v9   ;;  %713 = vperm.xlu0 %1078, %v667_v12  }
  0x10   :  { %692 = vperm.xlu1 %1077, %v660_v11   ;;  %719 = vperm.xlu0 %1078, %v669_v16  }
  0x12   :  { %1023 = vmatmul.mubr.msk.bf16.gmra.mxu0 %vm137_vm1, %v1083_v6  ;;  %1051 = vmatmul.mubr.msk.bf16.gmra.mxu1 %vm137_vm1, %v1084_v7 }
  0x13   :  { %1026 = vmatprep.mubr.msk.bf16.mxu0 %vm1145_vm0, %v1144_v0  ;;  %1054 = vmatprep.mubr.msk.bf16.mxu1 %vm1145_vm0, %v1144_v0 }
  0x14   :  { %695 = vperm.xlu1 %1077, %v661_v15   ;;  %725 = vperm.xlu0 %1078, %v671_v18  }
  0x18   :  { %698 = vperm.xlu1 %1077, %v662_v17  }
  0x1a   :  { %1027 = vmatmul.mubr.msk.bf16.gmra.mxu0 %vm137_vm1, %v1085_v13  ;;  %1055 = vmatmul.mubr.msk.bf16.gmra.mxu1 %vm137_vm1, %v1086_v14  ;;  %v11_v13 = vstv %s1631_s5 }
  0x1b   :  { %1030 = vmatprep.mubr.msk.bf16.mxu0 %vm1145_vm0, %v1144_v0  ;;  %1058 = vmatprep.mubr.msk.bf16.mxu1 %vm1145_vm0, %v1144_v0  ;;  %12 = vst [vmem:[#allocation2] sm:$0x1] %v11_v13 }
  0x1c   :  { %701 = vperm.xlu1 %1077, %v663_v21  }
  0x20   :  { %704 = vperm.xlu1 %1077, %v664_v22  }
  0x22   :  { %1031 = vmatmul.mubr.msk.bf16.gmra.mxu0 %vm137_vm1, %v1087_v19  ;;  %1059 = vmatmul.mubr.msk.bf16.gmra.mxu1 %vm137_vm1, %v1088_v20 }
  0x23   :  { %1034 = vmatprep.mubr.msk.bf16.mxu0 %vm1145_vm0, %v1144_v0  ;;  %1062 = vmatprep.mubr.msk.bf16.mxu1 %vm1145_vm0, %v1144_v0 }
  0x24   :  { %707 = vperm.xlu1 %1077, %v665_v25  }
  0x28   :  { %710 = vperm.xlu1 %1077, %v666_v26  }
  0x2a   :  { %1035 = vmatmul.mubr.msk.bf16.gmra.mxu0 %vm137_vm1, %v1089_v23  ;;  %1063 = vmatmul.mubr.msk.bf16.gmra.mxu1 %vm137_vm1, %v1090_v24 }
  0x2b   :  { %1038 = vmatprep.mubr.msk.bf16.mxu0 %vm1145_vm0, %v1144_v0  ;;  %1066 = vmatprep.mubr.msk.bf16.mxu1 %vm1145_vm0, %v1144_v0 }
  0x2c   :  { %716 = vperm.xlu1 %1077, %v668_v29   ;;  %v1378_v29 = vld [vmem:[%s1632_s4] ss:$0 sm:$0xff] }
  0x30   :  { %722 = vperm.xlu1 %1077, %v670_v30  }
  0x32   :  { %1039 = vmatmul.mubr.msk.bf16.gmra.mxu0 %vm137_vm1, %v1091_v27  ;;  %1067 = vmatmul.mubr.msk.bf16.gmra.mxu1 %vm137_vm1, %v1092_v28 }
  0x33   :  { %1042 = vmatprep.mubr.msk.bf16.mxu0 %vm1145_vm0, %v1144_v0 }
  0x34   :  { %728 = vperm.xlu1 %1077, %v672_v32  }
  0x3a   :  { %1043 = vmatmul.mubr.msk.bf16.gmra.mxu0 %vm137_vm1, %v1093_v31 }
  0xca   :  { %v211_v34 = vpop.f32.mrf.mxu0  ;;  %v267_v35 = vpop.f32.mrf.mxu1 }
  0xcb   :  { %v1324_v36 = vadd.f32 %v1321_v33, %v211_v34  ;;  %v1327_v37 = vadd.f32 %v1321_v33, %v267_v35 }
  0xcc   :  { %v1020_v38 = vpop.f32.mrf.mxu0  ;;  %v1048_v39 = vpop.f32.mrf.mxu1 }
  0xcd   :  { %v313_v40 = vmul.f32 0.5, %v1324_v36  ;;  %v327_v41 = vmul.f32 0.5, %v1327_v37 }
  0xce   :  { %v214_v42 = vpop.f32.mrf.mxu0  ;;  %v270_v43 = vpop.f32.mrf.mxu1 }
  0xcf   :  { %1094 = vtanh.f32 %v313_v40  ;;  %v1332_v44 = vadd.f32 %v1321_v33, %v214_v42  ;;  %v1335_v45 = vadd.f32 %v1321_v33, %v270_v43 }
  0xd0   :  { %1096 = vtanh.f32 %v327_v41  ;;  %v1021_v46 = vpop.f32.mrf.mxu0  ;;  %v1049_v47 = vpop.f32.mrf.mxu1 }
  0xd1   :  { %v314_v48 = vmul.f32 0.5, %v1332_v44  ;;  %v328_v49 = vmul.f32 0.5, %v1335_v45 }
  0xd2   :  { %v219_v50 = vpop.f32.mrf.mxu0  ;;  %v275_v51 = vpop.f32.mrf.mxu1 }
  0xd3   :  { %1098 = vtanh.f32 %v314_v48  ;;  %v1340_v52 = vadd.f32 %v1321_v33, %v219_v50  ;;  %v1343_v53 = vadd.f32 %v1321_v33, %v275_v51 }
  0xd4   :  { %1100 = vtanh.f32 %v328_v49  ;;  %v1024_v54 = vpop.f32.mrf.mxu0  ;;  %v1052_v55 = vpop.f32.mrf.mxu1 }
  0xd5   :  { %v315_v56 = vmul.f32 0.5, %v1340_v52  ;;  %v329_v57 = vmul.f32 0.5, %v1343_v53 }
  0xd6   :  { %v222_v58 = vpop.f32.mrf.mxu0  ;;  %v278_v59 = vpop.f32.mrf.mxu1 }
  0xd7   :  { %1102 = vtanh.f32 %v315_v56  ;;  %v1348_v60 = vadd.f32 %v1321_v33, %v222_v58  ;;  %v1351_v61 = vadd.f32 %v1321_v33, %v278_v59 }
  0xd8   :  { %1104 = vtanh.f32 %v329_v57  ;;  %v1025_v62 = vpop.f32.mrf.mxu0  ;;  %v1053_v63 = vpop.f32.mrf.mxu1 }
  0xd9   :  { %v316_v0 = vmul.f32 0.5, %v1348_v60  ;;  %v330_v1 = vmul.f32 0.5, %v1351_v61 }
  0xda   :  { %v227_v2 = vpop.f32.mrf.mxu0  ;;  %v283_v3 = vpop.f32.mrf.mxu1 }
  0xdb   :  { %1106 = vtanh.f32 %v316_v0  ;;  %v1356_v4 = vadd.f32 %v1321_v33, %v227_v2  ;;  %v1359_v5 = vadd.f32 %v1321_v33, %v283_v3 }
  0xdc   :  { %v1095_v6 = vpop.eup %1094  ;;  %1108 = vtanh.f32 %v330_v1  ;;  %v1028_v7 = vpop.f32.mrf.mxu0 }
  0xdd   :  { %v1056_v8 = vpop.f32.mrf.mxu1  ;;  %v1097_v9 = vpop.eup %1096  ;;  %v363_v10 = vadd.f32 1.0, %v1095_v6  ;;  %v317_v11 = vmul.f32 0.5, %v1356_v4  ;;  %v331_v12 = vmul.f32 0.5, %v1359_v5 }
  0xde   :  { %v377_v14 = vadd.f32 1.0, %v1097_v9  ;;  %v230_v15 = vpop.f32.mrf.mxu0 }
  0xdf   :  { %v286_v16 = vpop.f32.mrf.mxu1  ;;  %v388_v17 = vmul.f32 0.5, %v363_v10  ;;  %1110 = vtanh.f32 %v317_v11  ;;  %v1367_v18 = vadd.f32 %v1321_v33, %v230_v15 }
  0xe0   :  { %v1370_v19 = vadd.f32 %v1321_v33, %v286_v16  ;;  %v1099_v20 = vpop.eup %1098  ;;  %v402_v21 = vmul.f32 0.5, %v377_v14  ;;  %1112 = vtanh.f32 %v331_v12  ;;  %v1029_v22 = vpop.f32.mrf.mxu0 }
  0xe1   :  { %v1057_v23 = vpop.f32.mrf.mxu1  ;;  %v1101_v24 = vpop.eup %1100  ;;  %v413_v25 = vmul.f32 %v388_v17, %v1324_v36  ;;  %v364_v26 = vadd.f32 1.0, %v1099_v20  ;;  %v318_v27 = vmul.f32 0.5, %v1367_v18 }
  0xe2   :  { %v332_v28 = vmul.f32 0.5, %v1370_v19  ;;  %v378_v30 = vadd.f32 1.0, %v1101_v24  ;;  %v235_v31 = vpop.f32.mrf.mxu0  ;;  %v427_v39 = vmul.f32 %v402_v21, %v1327_v37 }
  0xe3   :  { %v291_v32 = vpop.f32.mrf.mxu1  ;;  %v389_v34 = vmul.f32 0.5, %v364_v26  ;;  %1114 = vtanh.f32 %v318_v27  ;;  %v1381_v35 = vadd.f32 %v1321_v33, %v235_v31  ;;  %v445_v43 = vmul.f32 %v1378_v29, %v413_v25 }
  0xe4   :  { %v1384_v36 = vadd.f32 %v1321_v33, %v291_v32  ;;  %v1103_v38 = vpop.eup %1102  ;;  %v403_v40 = vmul.f32 0.5, %v378_v30  ;;  %1116 = vtanh.f32 %v332_v28  ;;  %v1032_v41 = vpop.f32.mrf.mxu0 }
  0xe5   :  { %v1060_v42 = vpop.f32.mrf.mxu1  ;;  %v1105_v46 = vpop.eup %1104  ;;  %v365_v47 = vadd.f32 1.0, %v1103_v38  ;;  %v319_v48 = vmul.f32 0.5, %v1381_v35  ;;  %v414_v50 = vmul.f32 %v389_v34, %v1332_v44  ;;  %470 = vadd.xlane.f32.xlu0 %v445_v43 }
  0xe6   :  { %v333_v49 = vmul.f32 0.5, %v1384_v36  ;;  %v428_v51 = vmul.f32 %v403_v40, %v1335_v45  ;;  %v379_v54 = vadd.f32 1.0, %v1105_v46  ;;  %v238_v55 = vpop.f32.mrf.mxu0  ;;  %v459_v45 = vmul.f32 %v1378_v29, %v427_v39 }
  0xe7   :  { %v294_v37 = vpop.f32.mrf.mxu1  ;;  %v390_v56 = vmul.f32 0.5, %v365_v47  ;;  %1118 = vtanh.f32 %v319_v48  ;;  %v1393_v57 = vadd.f32 %v1321_v33, %v238_v55  ;;  %v446_v11 = vmul.f32 %v1378_v29, %v414_v50 }
  0xe8   :  { %v1396_v58 = vadd.f32 %v1321_v33, %v294_v37  ;;  %v1107_v59 = vpop.eup %1106  ;;  %v404_v62 = vmul.f32 0.5, %v379_v54  ;;  %1120 = vtanh.f32 %v333_v49  ;;  %v1033_v63 = vpop.f32.mrf.mxu0  ;;  %v460_v44 = vmul.f32 %v1378_v29, %v428_v51 }
  0xe9   :  { %v1061_v0 = vpop.f32.mrf.mxu1  ;;  %v1109_v1 = vpop.eup %1108  ;;  %v415_v2 = vmul.f32 %v390_v56, %v1340_v52  ;;  %v366_v3 = vadd.f32 1.0, %v1107_v59  ;;  %v320_v6 = vmul.f32 0.5, %v1393_v57  ;;  %498 = vadd.xlane.f32.xlu0 %v459_v45 }
  0xea   :  { %v334_v7 = vmul.f32 0.5, %v1396_v58  ;;  %v380_v8 = vadd.f32 1.0, %v1109_v1  ;;  %500 = vadd.xlane.f32.xlu1 %v460_v44  ;;  %v243_v9 = vpop.f32.mrf.mxu0  ;;  %v429_v15 = vmul.f32 %v404_v62, %v1343_v53 }
  0xeb   :  { %v299_v10 = vpop.f32.mrf.mxu1  ;;  %v391_v12 = vmul.f32 0.5, %v366_v3  ;;  %1122 = vtanh.f32 %v320_v6  ;;  %v1405_v13 = vadd.f32 %v1321_v33, %v243_v9  ;;  %v447_v21 = vmul.f32 %v1378_v29, %v415_v2 }
  0xec   :  { %v1408_v14 = vadd.f32 %v1321_v33, %v299_v10  ;;  %v1111_v52 = vpop.eup %1110  ;;  %v405_v16 = vmul.f32 0.5, %v380_v8  ;;  %1124 = vtanh.f32 %v334_v7  ;;  %v1036_v17 = vpop.f32.mrf.mxu0 }
  0xed   :  { %v1064_v20 = vpop.f32.mrf.mxu1  ;;  %v1113_v22 = vpop.eup %1112  ;;  %v416_v23 = vmul.f32 %v391_v12, %v1348_v60  ;;  %v367_v24 = vadd.f32 1.0, %v1111_v52  ;;  %v321_v25 = vmul.f32 0.5, %v1405_v13  ;;  %472 = vadd.xlane.f32.xlu0 %v446_v11 }
  0xee   :  { %v335_v26 = vmul.f32 0.5, %v1408_v14  ;;  %v430_v27 = vmul.f32 %v405_v16, %v1351_v61  ;;  %v381_v28 = vadd.f32 1.0, %v1113_v22  ;;  %474 = vadd.xlane.f32.xlu1 %v447_v21  ;;  %v246_v53 = vpop.f32.mrf.mxu0  ;;  %v461_v61 = vmul.f32 %v1378_v29, %v429_v15 }
  0xef   :  { %v302_v30 = vpop.f32.mrf.mxu1  ;;  %v392_v31 = vmul.f32 0.5, %v367_v24  ;;  %1126 = vtanh.f32 %v321_v25  ;;  %v1417_v32 = vadd.f32 %v1321_v33, %v246_v53  ;;  %v448_v41 = vmul.f32 %v1378_v29, %v416_v23 }
  0xf0   :  { %v1420_v34 = vadd.f32 %v1321_v33, %v302_v30  ;;  %v1115_v60 = vpop.eup %1114  ;;  %v406_v38 = vmul.f32 0.5, %v381_v28  ;;  %1128 = vtanh.f32 %v335_v26  ;;  %v1037_v39 = vpop.f32.mrf.mxu0  ;;  %v462_v51 = vmul.f32 %v1378_v29, %v430_v27 }
  0xf1   :  { %v1065_v40 = vpop.f32.mrf.mxu1  ;;  %v1117_v42 = vpop.eup %1116  ;;  %v417_v43 = vmul.f32 %v392_v31, %v1356_v4  ;;  %v368_v46 = vadd.f32 1.0, %v1115_v60  ;;  %v322_v47 = vmul.f32 0.5, %v1417_v32  ;;  %502 = vadd.xlane.f32.xlu0 %v461_v61 }
  0xf2   :  { %v336_v48 = vmul.f32 0.5, %v1420_v34  ;;  %v382_v49 = vadd.f32 1.0, %v1117_v42  ;;  %476 = vadd.xlane.f32.xlu1 %v448_v41  ;;  %v251_v50 = vpop.f32.mrf.mxu0  ;;  %v431_v59 = vmul.f32 %v406_v38, %v1359_v5 }
  0xf3   :  { %v307_v54 = vpop.f32.mrf.mxu1  ;;  %v393_v55 = vmul.f32 0.5, %v368_v46  ;;  %1130 = vtanh.f32 %v322_v47  ;;  %v1429_v37 = vadd.f32 %v1321_v33, %v251_v50  ;;  %v449_v56 = vmul.f32 %v1378_v29, %v417_v43 }
  0xf4   :  { %v1119_v4 = vpop.eup %1118  ;;  %v407_v62 = vmul.f32 0.5, %v382_v49  ;;  %1132 = vtanh.f32 %v336_v48  ;;  %v1040_v63 = vpop.f32.mrf.mxu0  ;;  %v1434_v0 = vadd.f32 %v1321_v33, %v307_v54  ;;  %v463_v16 = vmul.f32 %v1378_v29, %v431_v59 }
  0xf5   :  { %v1068_v44 = vpop.f32.mrf.mxu1  ;;  %v1121_v45 = vpop.eup %1120  ;;  %v418_v1 = vmul.f32 %v393_v55, %v1367_v18  ;;  %v369_v2 = vadd.f32 1.0, %v1119_v4  ;;  %v323_v3 = vmul.f32 0.5, %v1429_v37  ;;  %478 = vadd.xlane.f32.xlu0 %v449_v56 }
  0xf6   :  { %v383_v6 = vadd.f32 1.0, %v1121_v45  ;;  %504 = vadd.xlane.f32.xlu1 %v462_v51  ;;  %v254_v7 = vpop.f32.mrf.mxu0  ;;  %v337_v8 = vmul.f32 0.5, %v1434_v0  ;;  %v432_v18 = vmul.f32 %v407_v62, %v1370_v19 }
  0xf7   :  { %v310_v5 = vpop.f32.mrf.mxu1  ;;  %v394_v9 = vmul.f32 0.5, %v369_v2  ;;  %1134 = vtanh.f32 %v323_v3  ;;  %v1440_v10 = vadd.f32 %v1321_v33, %v254_v7  ;;  %v450_v11 = vmul.f32 %v1378_v29, %v418_v1 }
  0xf8   :  { %v1123_v12 = vpop.eup %1122  ;;  %v408_v52 = vmul.f32 0.5, %v383_v6  ;;  %1136 = vtanh.f32 %v337_v8  ;;  %v1041_v15 = vpop.f32.mrf.mxu0 }
  0xf9   :  { %v1069_v17 = vpop.f32.mrf.mxu1  ;;  %v1125_v20 = vpop.eup %1124  ;;  %v419_v21 = vmul.f32 %v394_v9, %v1381_v35  ;;  %v370_v22 = vadd.f32 1.0, %v1123_v12  ;;  %v324_v23 = vmul.f32 0.5, %v1440_v10  ;;  %506 = vadd.xlane.f32.xlu0 %v463_v16  ;;  %v464_v35 = vmul.f32 %v1378_v29, %v432_v18 }
  0xfa   :  { %v384_v24 = vadd.f32 1.0, %v1125_v20  ;;  %480 = vadd.xlane.f32.xlu1 %v450_v11  ;;  %v259_v25 = vpop.f32.mrf.mxu0  ;;  %v433_v53 = vmul.f32 %v408_v52, %v1384_v36 }
  0xfb   :  { %v395_v26 = vmul.f32 0.5, %v370_v22  ;;  %1138 = vtanh.f32 %v324_v23  ;;  %v1448_v19 = vadd.f32 %v1321_v33, %v259_v25  ;;  %v451_v27 = vmul.f32 %v1378_v29, %v419_v21  ;;  %v674_v25 = vld [vmem:[%s1629_s1 + $0x88] sm:$0xff] }
  0xfc   :  { %v1127_v28 = vpop.eup %1126  ;;  %v409_v30 = vmul.f32 0.5, %v384_v24  ;;  %v1044_v31 = vpop.f32.mrf.mxu0  ;;  %v465_v49 = vmul.f32 %v1378_v29, %v433_v53 }
  0xfd   :  { %v1129_v60 = vpop.eup %1128  ;;  %v420_v38 = vmul.f32 %v395_v26, %v1393_v57  ;;  %v371_v39 = vadd.f32 1.0, %v1127_v28  ;;  %v325_v40 = vmul.f32 0.5, %v1448_v19  ;;  %482 = vadd.xlane.f32.xlu0 %v451_v27  ;;  %v673_v26 = vld [vmem:[%s1629_s1 + $0x80] sm:$0xff]  ;;  %v675_v27 = vld [vmem:[%s1629_s1 + $0x90] sm:$0xff] }
  0xfe   :  { %v385_v61 = vadd.f32 1.0, %v1129_v60  ;;  %508 = vadd.xlane.f32.xlu1 %v464_v35  ;;  %v262_v41 = vpop.f32.mrf.mxu0  ;;  %v434_v47 = vmul.f32 %v409_v30, %v1396_v58 }
  0xff   :  { %v396_v42 = vmul.f32 0.5, %v371_v39  ;;  %1140 = vtanh.f32 %v325_v40  ;;  %v452_v43 = vmul.f32 %v1378_v29, %v420_v38  ;;  %v263_v36 = vadd.f32 %v1321_v33, %v262_v41  ;;  %v676_v38 = vld [vmem:[%s1629_s1 + $0x98] sm:$0xff]  ;;  %v1508_v40 = vpop.permute.xlu0 %686 }
 0x100   :  { %v1131_v46 = vpop.eup %1130  ;;  %v410_v48 = vmul.f32 0.5, %v385_v61  ;;  %v1045_v57 = vpop.f32.mrf.mxu0  ;;  %v466_v63 = vmul.f32 %v1378_v29, %v434_v47  ;;  %v678_v61 = vld [vmem:[%s1629_s1 + $0xa8] sm:$0xff] }
 0x101   :  { %v1133_v50 = vpop.eup %1132  ;;  %v421_v51 = vmul.f32 %v396_v42, %v1405_v13  ;;  %v372_v54 = vadd.f32 1.0, %v1131_v46  ;;  %v326_v55 = vmul.f32 0.5, %v263_v36  ;;  %510 = vadd.xlane.f32.xlu0 %v465_v49 }
 0x102   :  { %v386_v56 = vadd.f32 1.0, %v1133_v50  ;;  %484 = vadd.xlane.f32.xlu1 %v452_v43  ;;  %v435_v62 = vmul.f32 %v410_v48, %v1408_v14  ;;  %v1525_v48 = vld [vmem:[#allocation2] ss:$0 sm:$0xff] }
 0x103   :  { %v397_v4 = vmul.f32 0.5, %v372_v54  ;;  %v453_v59 = vmul.f32 %v1378_v29, %v421_v51  ;;  %1142 = vtanh.f32 %v326_v55  ;;  %v1515_v42 = vpop.permute.xlu0 %713 }
 0x104   :  { %v1135_v33 = vpop.eup %1134  ;;  %v411_v58 = vmul.f32 0.5, %v386_v56  ;;  %v467_v5 = vmul.f32 %v1378_v29, %v435_v62 }
 0x105   :  { %v1137_v44 = vpop.eup %1136  ;;  %v422_v45 = vmul.f32 %v397_v4, %v1417_v32  ;;  %v373_v1 = vadd.f32 1.0, %v1135_v33  ;;  %486 = vadd.xlane.f32.xlu0 %v453_v59 }
 0x106   :  { %v387_v13 = vadd.f32 1.0, %v1137_v44  ;;  %512 = vadd.xlane.f32.xlu1 %v466_v63  ;;  %v436_v7 = vmul.f32 %v411_v58, %v1420_v34 }
 0x107   :  { %v398_v2 = vmul.f32 0.5, %v373_v1  ;;  %v454_v3 = vmul.f32 %v1378_v29, %v422_v45 }
 0x108   :  { %v1139_v6 = vpop.eup %1138  ;;  %v412_v8 = vmul.f32 0.5, %v387_v13  ;;  %v468_v52 = vmul.f32 %v1378_v29, %v436_v7 }
 0x109   :  { %v423_v14 = vmul.f32 %v398_v2, %v1429_v37  ;;  %v374_v9 = vadd.f32 1.0, %v1139_v6  ;;  %514 = vadd.xlane.f32.xlu0 %v467_v5 }
 0x10a   :  { %v437_v11 = vmul.f32 %v412_v8, %v1434_v0  ;;  %488 = vadd.xlane.f32.xlu1 %v454_v3 }
 0x10b   :  { %v399_v32 = vmul.f32 0.5, %v374_v9  ;;  %v455_v12 = vmul.f32 %v1378_v29, %v423_v14 }
 0x10c   :  { %v1141_v18 = vpop.eup %1140  ;;  %v469_v34 = vmul.f32 %v1378_v29, %v437_v11 }
 0x10d   :  { %v424_v15 = vmul.f32 %v399_v32, %v1440_v10  ;;  %v375_v16 = vadd.f32 1.0, %v1141_v18  ;;  %490 = vadd.xlane.f32.xlu0 %v455_v12 }
 0x10e   :  { %516 = vadd.xlane.f32.xlu1 %v468_v52 }
 0x10f   :  { %v400_v17 = vmul.f32 0.5, %v375_v16  ;;  %v456_v37 = vmul.f32 %v1378_v29, %v424_v15 }
 0x110   :  { %v1143_v20 = vpop.eup %1142 }
 0x111   :  { %v425_v0 = vmul.f32 %v400_v17, %v1448_v19  ;;  %v376_v21 = vadd.f32 1.0, %v1143_v20  ;;  %518 = vadd.xlane.f32.xlu0 %v469_v34  ;;  %v1483_v19 = vpop.permute.xlu1 %683 }
 0x112   :  { %492 = vadd.xlane.f32.xlu1 %v456_v37 }
 0x113   :  { %v401_v22 = vmul.f32 0.5, %v376_v21  ;;  %v457_v23 = vmul.f32 %v1378_v29, %v425_v0 }
 0x115   :  { %v426_v24 = vmul.f32 %v401_v22, %v263_v36  ;;  %494 = vadd.xlane.f32.xlu0 %v457_v23  ;;  %v1491_v28 = vpop.permute.xlu1 %689  ;;  %v1519_v36 = vpop.permute.xlu0 %719 }
 0x117   :  { %v458_v10 = vmul.f32 %v1378_v29, %v426_v24  ;;  %v677_v29 = vld [vmem:[%s1629_s1 + $0xa0] sm:$0xff] }
 0x119   :  { %v1493_v53 = vpop.permute.xlu1 %692  ;;  %v1523_v47 = vpop.permute.xlu0 %725 }
 0x11d   :  { %v1495_v30 = vpop.permute.xlu1 %695 }
 0x121   :  { %v1497_v35 = vpop.permute.xlu1 %698 }
 0x123   :  { %734 = vperm.xlu1 %1077, %v674_v25  }
 0x125   :  { %v1499_v31 = vpop.permute.xlu1 %701 }
 0x129   :  { %v1501_v60 = vpop.permute.xlu1 %704 }
 0x12b   :  { %731 = vperm.xlu0 %1078, %v673_v26   ;;  %v679_v26 = vld [vmem:[%s1629_s1 + $0xb0] sm:$0xff] }
 0x12d   :  { %v1506_v39 = vpop.permute.xlu1 %707 }
 0x12f   :  { %737 = vperm.xlu0 %1078, %v675_v27   ;;  %v680_v27 = vld [vmem:[%s1629_s1 + $0xb8] sm:$0xff] }
 0x131   :  { %v1513_v41 = vpop.permute.xlu1 %710 }
 0x133   :  { %743 = vperm.xlu0 %1078, %v677_v29   ;;  %v681_v29 = vld [vmem:[%s1629_s1 + $0xc0] sm:$0xff] }
 0x135   :  { %v1517_v43 = vpop.permute.xlu1 %716 }
 0x139   :  { %v1521_v46 = vpop.permute.xlu1 %722 }
 0x13d   :  { %v1527_v49 = vpop.permute.xlu1 %728 }
 0x147   :  { %496 = vadd.xlane.f32.xlu1 %v458_v10 }
 0x158   :  { %740 = vperm.xlu1 %1077, %v676_v38  }
 0x15c   :  { %746 = vperm.xlu1 %1077, %v678_v61  }
 0x16e   :  { %v471_v57 = vpop.xlane.xlu0 %470 }
 0x16f   :  { %v527_v50 = vadd.f32 %v1525_v48, %v471_v57 }
 0x171   :  { %784 = vperm.xlu0 %1078, %v527_v50  }
 0x172   :  { %v499_v54 = vpop.xlane.xlu0 %498 }
 0x173   :  { %v501_v51 = vpop.xlane.xlu1 %500  ;;  %v541_v55 = vadd.f32 %v1525_v48, %v499_v54 }
 0x174   :  { %v542_v63 = vadd.f32 %v1525_v48, %v501_v51 }
 0x175   :  { %854 = vperm.xlu0 %1078, %v541_v55  }
 0x176   :  { %v473_v56 = vpop.xlane.xlu0 %472 }
 0x177   :  { %v475_v4 = vpop.xlane.xlu1 %474  ;;  %v528_v59 = vadd.f32 %v1525_v48, %v473_v56 }
 0x178   :  { %v529_v33 = vadd.f32 %v1525_v48, %v475_v4 }
 0x179   :  { %789 = vperm.xlu1 %1077, %v528_v59  }
 0x17a   :  { %794 = vperm.xlu0 %1078, %v529_v33   ;;  %v503_v62 = vpop.xlane.xlu0 %502 }
 0x17b   :  { %v477_v58 = vpop.xlane.xlu1 %476  ;;  %v543_v24 = vadd.f32 %v1525_v48, %v503_v62 }
 0x17c   :  { %v530_v1 = vadd.f32 %v1525_v48, %v477_v58 }
 0x17d   :  { %859 = vperm.xlu1 %1077, %v542_v63   ;;  %v655_v63 = vlaneseq }
 0x17e   :  { %v479_v45 = vpop.xlane.xlu0 %478 }
 0x17f   :  { %v505_v44 = vpop.xlane.xlu1 %504  ;;  %v531_v13 = vadd.f32 %v1525_v48, %v479_v45  ;;  %v1573_v45 = vand.u32 127, %v655_v63 }
 0x180   :  { %v544_v50 = vadd.f32 %v1525_v48, %v505_v44 }
 0x181   :  { %804 = vperm.xlu0 %1078, %v531_v13   ;;  %799 = vperm.xlu1 %1077, %v530_v1   ;;  %vm757_vm2 = vcmp.eq.s32.totalorder %v1483_v19, %v1573_v45  ;;  %vm758_vm3 = vcmp.eq.s32.totalorder %v1508_v40, %v1573_v45  ;;  %vm759_vm4 = vcmp.eq.s32.totalorder %v1491_v28, %v1573_v45 }
 0x182   :  { %v507_v2 = vpop.xlane.xlu0 %506  ;;  %vm760_vm5 = vcmp.eq.s32.totalorder %v1493_v53, %v1573_v45  ;;  %vm761_vm6 = vcmp.eq.s32.totalorder %v1495_v30, %v1573_v45  ;;  %vm762_vm7 = vcmp.eq.s32.totalorder %v1497_v35, %v1573_v45  ;;  %vm763_vm8 = vcmp.eq.s32.totalorder %v1499_v31, %v1573_v45 }
 0x183   :  { %v481_v3 = vpop.xlane.xlu1 %480  ;;  %v545_v10 = vadd.f32 %v1525_v48, %v507_v2  ;;  %vm764_vm9 = vcmp.eq.s32.totalorder %v1501_v60, %v1573_v45  ;;  %vm765_vm10 = vcmp.eq.s32.totalorder %v1506_v39, %v1573_v45  ;;  %vm766_vm11 = vcmp.eq.s32.totalorder %v1513_v41, %v1573_v45 }
 0x184   :  { %v532_v6 = vadd.f32 %v1525_v48, %v481_v3  ;;  %vm767_vm12 = vcmp.eq.s32.totalorder %v1515_v42, %v1573_v45  ;;  %vm768_vm13 = vcmp.eq.s32.totalorder %v1517_v43, %v1573_v45  ;;  %vm769_vm14 = vcmp.eq.s32.totalorder %v1519_v36, %v1573_v45 }
 0x185   :  { %vm770_vm15 = vcmp.eq.s32.totalorder %v1521_v46, %v1573_v45  ;;  %vm771_vm0 = vcmp.eq.s32.totalorder %v1523_v47, %v1573_v45  ;;  %vm772_vm1 = vcmp.eq.s32.totalorder %v1527_v49, %v1573_v45 }
 0x186   :  { %809 = vperm.xlu1 %1077, %v532_v6   ;;  %v483_v8 = vpop.xlane.xlu0 %482 }
 0x187   :  { %v509_v7 = vpop.xlane.xlu1 %508  ;;  %v533_v5 = vadd.f32 %v1525_v48, %v483_v8 }
 0x188   :  { %v546_v51 = vadd.f32 %v1525_v48, %v509_v7 }
 0x189   :  { %814 = vperm.xlu0 %1078, %v533_v5  }
 0x18a   :  { %v511_v14 = vpop.xlane.xlu0 %510 }
 0x18b   :  { %v485_v9 = vpop.xlane.xlu1 %484  ;;  %v547_v25 = vadd.f32 %v1525_v48, %v511_v14 }
 0x18c   :  { %v534_v11 = vadd.f32 %v1525_v48, %v485_v9 }
 0x18e   :  { %819 = vperm.xlu1 %1077, %v534_v11   ;;  %v487_v12 = vpop.xlane.xlu0 %486 }
 0x18f   :  { %v513_v32 = vpop.xlane.xlu1 %512  ;;  %v535_v18 = vadd.f32 %v1525_v48, %v487_v12 }
 0x190   :  { %v548_v54 = vadd.f32 %v1525_v48, %v513_v32 }
 0x191   :  { %824 = vperm.xlu0 %1078, %v535_v18  }
 0x192   :  { %v515_v52 = vpop.xlane.xlu0 %514 }
 0x193   :  { %v489_v15 = vpop.xlane.xlu1 %488  ;;  %v549_v56 = vadd.f32 %v1525_v48, %v515_v52 }
 0x194   :  { %v536_v16 = vadd.f32 %v1525_v48, %v489_v15 }
 0x196   :  { %829 = vperm.xlu1 %1077, %v536_v16   ;;  %v491_v17 = vpop.xlane.xlu0 %490 }
 0x197   :  { %v517_v34 = vpop.xlane.xlu1 %516  ;;  %v537_v37 = vadd.f32 %v1525_v48, %v491_v17 }
 0x198   :  { %v550_v59 = vadd.f32 %v1525_v48, %v517_v34 }
 0x199   :  { %834 = vperm.xlu0 %1078, %v537_v37  }
 0x19a   :  { %v519_v20 = vpop.xlane.xlu0 %518 }
 0x19b   :  { %v493_v0 = vpop.xlane.xlu1 %492  ;;  %v551_v33 = vadd.f32 %v1525_v48, %v519_v20 }
 0x19c   :  { %v538_v21 = vadd.f32 %v1525_v48, %v493_v0 }
 0x19e   :  { %839 = vperm.xlu1 %1077, %v538_v21   ;;  %v495_v22 = vpop.xlane.xlu0 %494 }
 0x19f   :  { %v539_v23 = vadd.f32 %v1525_v48, %v495_v22  ;;  %v1556_v38 = vpop.permute.xlu1 %734 }
 0x1a1   :  { %844 = vperm.xlu0 %1078, %v539_v23  }
 0x1a5   :  { %864 = vperm.xlu0 %1078, %v543_v24  }
 0x1a6   :  { %v1562_v55 = vpop.permute.xlu0 %731 }
 0x1a9   :  { %874 = vperm.xlu0 %1078, %v545_v10  }
 0x1aa   :  { %v1565_v4 = vpop.permute.xlu0 %737 }
 0x1ad   :  { %884 = vperm.xlu0 %1078, %v547_v25  }
 0x1ae   :  { %v1569_v62 = vpop.permute.xlu0 %743 }
 0x1b1   :  { %749 = vperm.xlu0 %1078, %v679_v26  }
 0x1b5   :  { %752 = vperm.xlu0 %1078, %v680_v27  }
 0x1b9   :  { %755 = vperm.xlu0 %1078, %v681_v29  }
 0x1d0   :  { %v497_v61 = vpop.xlane.xlu1 %496 }
 0x1d1   :  { %v540_v57 = vadd.f32 %v1525_v48, %v497_v61 }
 0x1d3   :  { %849 = vperm.xlu1 %1077, %v540_v57  }
 0x1d4   :  { %v1571_v58 = vpop.permute.xlu1 %740 }
 0x1d7   :  { %869 = vperm.xlu1 %1077, %v544_v50  }
 0x1d8   :  { %v1575_v1 = vpop.permute.xlu1 %746 }
 0x1db   :  { %879 = vperm.xlu1 %1077, %v546_v51  }
 0x1df   :  { %889 = vperm.xlu1 %1077, %v548_v54  }
 0x1e3   :  { %894 = vperm.xlu1 %1077, %v549_v56  }
 0x1e7   :  { %899 = vperm.xlu1 %1077, %v550_v59  }
 0x1eb   :  { %904 = vperm.xlu1 %1077, %v551_v33  }
 0x1ec   :  { %v785_v44 = vpop.permute.xlu0 %784 }
 0x1ed   :  { %v907_v3 = vsel %vm757_vm2, %v785_v44, 0.0  ;;  %vm773_vm2 = vcmp.eq.s32.totalorder %v1562_v55, %v1573_v45 }
 0x1f0   :  { %v855_v13 = vpop.permute.xlu0 %854 }
 0x1f1   :  { %v921_v57 = vsel %vm771_vm0, %v855_v13, 0.0 }
 0x1f4   :  { %v790_v48 = vpop.permute.xlu1 %789 }
 0x1f5   :  { %v795_v2 = vpop.permute.xlu0 %794  ;;  %v908_v6 = vsel %vm758_vm3, %v790_v48, 0.0  ;;  %vm774_vm3 = vcmp.eq.s32.totalorder %v1556_v38, %v1573_v45 }
 0x1f6   :  { %v932_v7 = vadd.f32 %v908_v6, %v907_v3  ;;  %v909_v8 = vsel %vm759_vm4, %v795_v2, 0.0  ;;  %vm775_vm4 = vcmp.eq.s32.totalorder %v1565_v4, %v1573_v45 }
 0x1f8   :  { %v860_v5 = vpop.permute.xlu1 %859  ;;  %v933_v14 = vadd.f32 %v932_v7, %v909_v8 }
 0x1f9   :  { %v922_v54 = vsel %vm772_vm1, %v860_v5, 0.0 }
 0x1fc   :  { %v805_v9 = vpop.permute.xlu0 %804  ;;  %v800_v11 = vpop.permute.xlu1 %799 }
 0x1fd   :  { %v910_v19 = vsel %vm760_vm5, %v800_v11, 0.0  ;;  %v911_v32 = vsel %vm761_vm6, %v805_v9, 0.0  ;;  %vm776_vm5 = vcmp.eq.s32.totalorder %v1571_v58, %v1573_v45  ;;  %vm777_vm6 = vcmp.eq.s32.totalorder %v1569_v62, %v1573_v45 }
 0x1fe   :  { %v934_v40 = vadd.f32 %v933_v14, %v910_v19 }
 0x200   :  { %v935_v12 = vadd.f32 %v934_v40, %v911_v32 }
 0x201   :  { %v810_v28 = vpop.permute.xlu1 %809 }
 0x202   :  { %v912_v18 = vsel %vm762_vm7, %v810_v28, 0.0  ;;  %vm778_vm7 = vcmp.eq.s32.totalorder %v1575_v1, %v1573_v45 }
 0x203   :  { %v936_v52 = vadd.f32 %v935_v12, %v912_v18 }
 0x204   :  { %v815_v15 = vpop.permute.xlu0 %814 }
 0x205   :  { %v913_v53 = vsel %vm763_vm8, %v815_v15, 0.0 }
 0x206   :  { %v937_v16 = vadd.f32 %v936_v52, %v913_v53 }
 0x209   :  { %v820_v34 = vpop.permute.xlu1 %819 }
 0x20a   :  { %v914_v30 = vsel %vm764_vm9, %v820_v34, 0.0 }
 0x20b   :  { %v938_v17 = vadd.f32 %v937_v16, %v914_v30 }
 0x20c   :  { %v825_v35 = vpop.permute.xlu0 %824 }
 0x20d   :  { %v915_v37 = vsel %vm765_vm10, %v825_v35, 0.0 }
 0x20e   :  { %v939_v20 = vadd.f32 %v938_v17, %v915_v37 }
 0x211   :  { %v830_v0 = vpop.permute.xlu1 %829 }
 0x212   :  { %v916_v31 = vsel %vm766_vm11, %v830_v0, 0.0 }
 0x213   :  { %v940_v21 = vadd.f32 %v939_v20, %v916_v31 }
 0x214   :  { %v835_v22 = vpop.permute.xlu0 %834 }
 0x215   :  { %v917_v60 = vsel %vm767_vm12, %v835_v22, 0.0 }
 0x216   :  { %v941_v23 = vadd.f32 %v940_v21, %v917_v60 }
 0x219   :  { %v840_v24 = vpop.permute.xlu1 %839 }
 0x21a   :  { %v918_v39 = vsel %vm768_vm13, %v840_v24, 0.0 }
 0x21b   :  { %v942_v10 = vadd.f32 %v941_v23, %v918_v39 }
 0x21c   :  { %v845_v25 = vpop.permute.xlu0 %844 }
 0x21d   :  { %v919_v41 = vsel %vm769_vm14, %v845_v25, 0.0 }
 0x21e   :  { %v943_v26 = vadd.f32 %v942_v10, %v919_v41 }
 0x220   :  { %v865_v27 = vpop.permute.xlu0 %864 }
 0x221   :  { %v923_v59 = vsel %vm773_vm2, %v865_v27, 0.0 }
 0x224   :  { %v875_v29 = vpop.permute.xlu0 %874 }
 0x225   :  { %v925_v49 = vsel %vm775_vm4, %v875_v29, 0.0 }
 0x228   :  { %v885_v50 = vpop.permute.xlu0 %884 }
 0x229   :  { %v927_v38 = vsel %vm777_vm6, %v885_v50, 0.0 }
 0x22c   :  { %v750_v47 = vpop.permute.xlu0 %749 }
 0x22d   :  { %vm779_vm8 = vcmp.eq.s32.totalorder %v750_v47, %v1573_v45 }
 0x230   :  { %v753_v3 = vpop.permute.xlu0 %752 }
 0x231   :  { %vm780_vm9 = vcmp.eq.s32.totalorder %v753_v3, %v1573_v45 }
 0x234   :  { %v756_v9 = vpop.permute.xlu0 %755 }
 0x235   :  { %vm781_vm10 = vcmp.eq.s32.totalorder %v756_v9, %v1573_v45 }
 0x24e   :  { %v850_v42 = vpop.permute.xlu1 %849 }
 0x24f   :  { %v920_v61 = vsel %vm770_vm15, %v850_v42, 0.0 }
 0x250   :  { %v944_v43 = vadd.f32 %v943_v26, %v920_v61 }
 0x252   :  { %v945_v36 = vadd.f32 %v944_v43, %v921_v57  ;;  %v870_v51 = vpop.permute.xlu1 %869 }
 0x253   :  { %v924_v63 = vsel %vm774_vm3, %v870_v51, 0.0 }
 0x254   :  { %v946_v56 = vadd.f32 %v945_v36, %v922_v54 }
 0x256   :  { %v947_v46 = vadd.f32 %v946_v56, %v923_v59  ;;  %v880_v33 = vpop.permute.xlu1 %879 }
 0x257   :  { %v926_v55 = vsel %vm776_vm5, %v880_v33, 0.0 }
 0x258   :  { %v948_v44 = vadd.f32 %v947_v46, %v924_v63 }
 0x25a   :  { %v949_v13 = vadd.f32 %v948_v44, %v925_v49  ;;  %v890_v2 = vpop.permute.xlu1 %889 }
 0x25b   :  { %v928_v4 = vsel %vm778_vm7, %v890_v2, 0.0 }
 0x25c   :  { %v950_v48 = vadd.f32 %v949_v13, %v926_v55 }
 0x25e   :  { %v951_v6 = vadd.f32 %v950_v48, %v927_v38  ;;  %v895_v7 = vpop.permute.xlu1 %894 }
 0x25f   :  { %v929_v5 = vsel %vm779_vm8, %v895_v7, 0.0 }
 0x260   :  { %v952_v8 = vadd.f32 %v951_v6, %v928_v4 }
 0x262   :  { %v953_v58 = vadd.f32 %v952_v8, %v929_v5  ;;  %v900_v14 = vpop.permute.xlu1 %899 }
 0x263   :  { %v930_v11 = vsel %vm780_vm9, %v900_v14, 0.0 }
 0x264   :  { %v954_v62 = vadd.f32 %v953_v58, %v930_v11 }
 0x266   :  { %v905_v19 = vpop.permute.xlu1 %904 }
 0x267   :  { %v931_v40 = vsel %vm781_vm10, %v905_v19, 0.0 }
 0x268   :  { %v955_v32 = vadd.f32 %v954_v62, %v931_v40 }
 0x26a   :  { %963 = vst [vmem:[%s1633_s6] sm:$0xff] %v955_v32 }

</bundles_post_ra>
